<compile_context>
chip_gen: v7x
topology: tpu7x:2x2x1
jax: 0.10.0
libtpu: 0.0.40
codegen_flags: <defaults>
</compile_context>

<pallas_src>
import jax
import jax.numpy as jnp
from jax.experimental import pallas as pl
from jax.experimental.pallas import tpu as pltpu


def gcn_kernel(x_ref, adjbd_ref, ws_ref, wn_ref, b_ref, o_ref):
    # x_ref:     (tb*N, F_in)   batch tile with batch/agent dims collapsed (f32)
    # adjbd_ref: (tb*N, tb*N)   kron(I_tb, norm_adj): block-diagonal, batch-invariant,
    #                           constant index_map -> fetched once and kept resident
    # ws_ref:    (F_in, F_out)  self-loop weight (pre-transposed)
    # wn_ref:    (F_in, F_out)  neighbour weight (pre-transposed)
    # b_ref:     (1, F_out)     b_self + b_neigh (exact: ReLU input is a plain sum)
    # o_ref:     (tb*N, F_out)  output tile, natural layout (no in-kernel relayout)
    x = x_ref[...]

    # Aggregation for the whole batch tile as ONE 2D MXU matmul
    # (K = tb*N <= MXU depth, so it is a single systolic pass):
    #   agg[b*N + n, :] = sum_m norm_adj[n, m] * x[b*N + m, :]
    agg = jnp.dot(adjbd_ref[...], x, preferred_element_type=jnp.float32)

    # Self + neighbour Linear as two dots summed (no lane-axis concat), with the
    # pre-summed bias.  F_in = F_out = 32 -> both dots fit in one MXU pass.
    y = (
        jnp.dot(x, ws_ref[...], preferred_element_type=jnp.float32)
        + jnp.dot(agg, wn_ref[...], preferred_element_type=jnp.float32)
        + b_ref[...]
    )
    o_ref[...] = jnp.maximum(y, 0.0).astype(o_ref.dtype)  # ReLU


def _select_batch_tile(B, N, *, mxu_k=256, batch_tile=None):
    """Batch elements per grid step.

    Caps tb*N at the MXU contraction depth so the block-diagonal adjacency
    stays <= 256 KiB and the aggregation matmul is one systolic pass.  For
    B >= 16 it forces >= 2 grid steps so v7x's two TensorCores share the work.
    """
    if batch_tile is not None:
        tb = int(min(max(batch_tile, 1), B))
    else:
        tb = max(1, min(B, mxu_k // max(N, 1)))
        if B >= 16:
            tb = min(tb, B // 2)
    # The grid needs B % tb == 0; blocks need (tb*N) % 8 == 0 unless the block
    # spans the full array dimension (single-tile case).
    while tb > 1 and (B % tb != 0 or (tb * N) % 8 != 0):
        tb -= 1
    if B % tb != 0 or ((tb * N) % 8 != 0 and tb * N != B * N):
        tb = B  # single step over the whole (small) batch; full-dim block is exempt
    return tb


def gcn_layer(x, adj, w_self, b_self, w_neigh, b_neigh, *,
              batch_tile=None, mxu_k=256):
    """x: [B, N, F_in], adj: [N, N]; weights pre-transposed [F_in, F_out].

    mxu_k: cap for tb*N (256 on v6e/v7x; use 128 on v5e to match its MXU depth
    and 16 MiB scoped-VMEM default).
    NOTE: norm_adj / adj_bd are batch-invariant; if `adj` is static across
    calls, hoist this preprocessing out of your jit and reuse it.
    """
    B, N, F_in = x.shape
    F_out = w_self.shape[1]

    tb = _select_batch_tile(B, N, mxu_k=mxu_k, batch_tile=batch_tile)
    num_tiles = pl.cdiv(B, tb)
    rows = tb * N

    # ---- batch-invariant preprocessing, hoisted out of the kernel ----------
    adj_f = adj.astype(jnp.float32)
    degree = jnp.maximum(jnp.sum(adj_f, axis=1, keepdims=True), 1.0)  # clamp(min=1)
    norm_adj = adj_f / degree
    # Block-diagonal replication: one 2D matmul aggregates a whole batch tile.
    # Bounded by the tile cap: adj_bd is at most (mxu_k, mxu_k) f32.
    adj_bd = jnp.kron(jnp.eye(tb, dtype=jnp.float32), norm_adj)       # (tb*N, tb*N)

    ws = w_self.astype(jnp.float32)
    wn = w_neigh.astype(jnp.float32)
    b_cat = (b_self + b_neigh).reshape(1, F_out).astype(jnp.float32)  # exact pre-ReLU

    x2d = x.reshape(B * N, F_in).astype(jnp.float32)

    # ---- explicit VMEM budget (generous headroom) + cost estimate ----------
    vmem_bytes = (
        2 * rows * rows * 4       # adj_bd (worst case double-buffered)
        + 2 * rows * F_in * 4     # x tile (double-buffered)
        + 2 * rows * F_out * 4    # out tile (double-buffered)
        + 4 * F_in * F_out * 4    # two weight matrices (double-buffered)
        + 2 * 8 * 128 * 4         # bias padded to one vreg tile
    )
    vmem_limit = int(min(max(4 * vmem_bytes, 8 << 20), 64 << 20))

    total_rows = B * N
    cost = pl.CostEstimate(
        flops=2 * total_rows * rows * F_in          # block-diagonal aggregation
        + 2 * 2 * total_rows * F_in * F_out,        # two linear layers
        transcendentals=0,
        bytes_accessed=(
            total_rows * F_in * 4                   # x read
            + num_tiles * rows * rows * 4           # adj_bd (worst case per tile)
            + num_tiles * (2 * F_in * F_out + F_out) * 4
            + total_rows * F_out * 4                # out write
        ),
    )

    out2d = pl.pallas_call(
        gcn_kernel,
        out_shape=jax.ShapeDtypeStruct((B * N, F_out), x.dtype),
        grid=(num_tiles,),
        in_specs=[
            pl.BlockSpec((rows, F_in), lambda i: (i, 0)),    # x tile (per grid step)
            pl.BlockSpec((rows, rows), lambda i: (0, 0)),    # adj_bd (resident)
            pl.BlockSpec((F_in, F_out), lambda i: (0, 0)),   # W_self (resident)
            pl.BlockSpec((F_in, F_out), lambda i: (0, 0)),   # W_neigh (resident)
            pl.BlockSpec((1, F_out), lambda i: (0, 0)),      # fused bias (resident)
        ],
        out_specs=pl.BlockSpec((rows, F_out), lambda i: (i, 0)),
        compiler_params=pltpu.CompilerParams(
            dimension_semantics=("parallel",),
            vmem_limit_bytes=vmem_limit,
        ),
        cost_estimate=cost,
    )(x2d, adj_bd, ws, wn, b_cat)

    return out2d.reshape(B, N, F_out)


def gcn_layer_ref(x, adj, w_self, b_self, w_neigh, b_neigh):
    """Pure-JAX reference mirroring the PyTorch forward."""
    self_loop = jnp.einsum("bnf,fo->bno", x, w_self) + b_self
    degree = jnp.maximum(adj.sum(axis=1), 1.0)          # clamp(min=1)
    norm_adj = adj / degree[:, None]
    aggregate = jnp.einsum("nm,bmf->bnf", norm_adj, x)
    neigh_out = jnp.einsum("bnf,fo->bno", aggregate, w_neigh) + b_neigh
    return jax.nn.relu(self_loop + neigh_out)


if __name__ == "__main__":
    # Small shapes consistent with the module: batch=2, n_agents=8, features 32->32
    B, N, F_in, F_out = 2, 8, 32, 32

    key = jax.random.PRNGKey(0)
    k_x, k_adj, k_ws, k_bs, k_wn, k_bn = jax.random.split(key, 6)

    x = jax.random.normal(k_x, (B, N, F_in), dtype=jnp.float32)
    # Binary adjacency, like a typical agent graph
    adj = (jax.random.uniform(k_adj, (N, N)) > 0.5).astype(jnp.float32)

    # nn.Linear weights init: normal(0, 0.1); stored pre-transposed [F_in, F_out].
    w_self = 0.1 * jax.random.normal(k_ws, (F_in, F_out), dtype=jnp.float32)
    w_neigh = 0.1 * jax.random.normal(k_wn, (F_in, F_out), dtype=jnp.float32)
    # nn.Linear default bias init: uniform(-1/sqrt(F_in), 1/sqrt(F_in))
    bound = 1.0 / (F_in ** 0.5)
    b_self = jax.random.uniform(k_bs, (F_out,), minval=-bound, maxval=bound, dtype=jnp.float32)
    b_neigh = jax.random.uniform(k_bn, (F_out,), minval=-bound, maxval=bound, dtype=jnp.float32)

    out = gcn_layer(x, adj, w_self, b_self, w_neigh, b_neigh)
    out = jax.block_until_ready(out)

    ref = gcn_layer_ref(x, adj, w_self, b_self, w_neigh, b_neigh)
    assert out.shape == (B, N, F_out)
    assert jnp.allclose(out, ref, atol=1e-4, rtol=1e-4), "mismatch vs reference"

    print("KERNEL_OK")
</pallas_src>

<mosaic_0001>
module attributes {stable_mosaic.version = 11 : i64} {
  func.func @gcn_kernel(%arg0: i32, %arg1: memref<16x32xf32, #tpu.memory_space<vmem>>, %arg2: memref<16x16xf32, #tpu.memory_space<vmem>>, %arg3: memref<32x32xf32, #tpu.memory_space<vmem>>, %arg4: memref<32x32xf32, #tpu.memory_space<vmem>>, %arg5: memref<1x32xf32, #tpu.memory_space<vmem>>, %arg6: memref<16x32xf32, #tpu.memory_space<vmem>>) attributes {dimension_semantics = [#tpu.dimension_semantics<parallel>], iteration_bounds = array<i64: 1>, scalar_prefetch = 0 : i64, scratch_operands = 0 : i64, tpu.core_type = #tpu.core_type<tc>, window_params = [{transform_indices = @transform_0, window_bounds = array<i64: 16, 32>}, {pipeline_mode = #tpu.pipeline_mode<synchronous>, transform_indices = @transform_1, window_bounds = array<i64: 16, 16>}, {pipeline_mode = #tpu.pipeline_mode<synchronous>, transform_indices = @transform_2, window_bounds = array<i64: 32, 32>}, {pipeline_mode = #tpu.pipeline_mode<synchronous>, transform_indices = @transform_3, window_bounds = array<i64: 32, 32>}, {pipeline_mode = #tpu.pipeline_mode<synchronous>, transform_indices = @transform_4, window_bounds = array<i64: 1, 32>}, {transform_indices = @transform_5, window_bounds = array<i64: 16, 32>}]} {
    %c0 = arith.constant 0 : index
    %c0_0 = arith.constant 0 : index
    %0 = vector.load %arg1[%c0, %c0_0] : memref<16x32xf32, #tpu.memory_space<vmem>>, vector<16x32xf32>
    %c0_1 = arith.constant 0 : index
    %c0_2 = arith.constant 0 : index
    %1 = vector.load %arg2[%c0_1, %c0_2] : memref<16x16xf32, #tpu.memory_space<vmem>>, vector<16x16xf32>
    %cst = arith.constant dense<0.000000e+00> : vector<16x32xf32>
    %2 = tpu.matmul %1, %0, %cst {dimension_numbers = #tpu.dot_dimension_numbers<[1], [0], [0], [1], [0, 0, 1, 1], [], []>} : vector<16x16xf32>, vector<16x32xf32>, vector<16x32xf32> -> vector<16x32xf32>
    %c0_3 = arith.constant 0 : index
    %c0_4 = arith.constant 0 : index
    %3 = vector.load %arg3[%c0_3, %c0_4] : memref<32x32xf32, #tpu.memory_space<vmem>>, vector<32x32xf32>
    %cst_5 = arith.constant dense<0.000000e+00> : vector<16x32xf32>
    %4 = tpu.matmul %0, %3, %cst_5 {dimension_numbers = #tpu.dot_dimension_numbers<[1], [0], [0], [1], [0, 0, 1, 1], [], []>} : vector<16x32xf32>, vector<32x32xf32>, vector<16x32xf32> -> vector<16x32xf32>
    %c0_6 = arith.constant 0 : index
    %c0_7 = arith.constant 0 : index
    %5 = vector.load %arg4[%c0_6, %c0_7] : memref<32x32xf32, #tpu.memory_space<vmem>>, vector<32x32xf32>
    %cst_8 = arith.constant dense<0.000000e+00> : vector<16x32xf32>
    %6 = tpu.matmul %2, %5, %cst_8 {dimension_numbers = #tpu.dot_dimension_numbers<[1], [0], [0], [1], [0, 0, 1, 1], [], []>} : vector<16x32xf32>, vector<32x32xf32>, vector<16x32xf32> -> vector<16x32xf32>
    %7 = arith.addf %4, %6 : vector<16x32xf32>
    %c0_9 = arith.constant 0 : index
    %c0_10 = arith.constant 0 : index
    %8 = vector.load %arg5[%c0_9, %c0_10] : memref<1x32xf32, #tpu.memory_space<vmem>>, vector<1x32xf32>
    %9 = vector.broadcast %8 : vector<1x32xf32> to vector<16x32xf32>
    %10 = arith.addf %7, %9 : vector<16x32xf32>
    %cst_11 = arith.constant 0.000000e+00 : f32
    %11 = vector.broadcast %cst_11 : f32 to vector<16x32xf32>
    %12 = arith.maximumf %10, %11 : vector<16x32xf32>
    %c0_12 = arith.constant 0 : index
    %c0_13 = arith.constant 0 : index
    %13 = vector.load %arg6[%c0_12, %c0_13] : memref<16x32xf32, #tpu.memory_space<vmem>>, vector<16x32xf32>
    tpu.vector_store %arg6[%c0_12, %c0_13], %12 {strides = array<i32>} : memref<16x32xf32, #tpu.memory_space<vmem>>, vector<16x32xf32>,
    return
  }
  func.func @transform_0(%arg0: i32) -> (i32, i32) {
    %c0_i32 = arith.constant 0 : i32
    %c0_i32_0 = arith.constant 0 : i32
    return %arg0, %c0_i32 : i32, i32
  }
  func.func @transform_1(%arg0: i32) -> (i32, i32) {
    %c0_i32 = arith.constant 0 : i32
    %c0_i32_0 = arith.constant 0 : i32
    %c0_i32_1 = arith.constant 0 : i32
    return %c0_i32, %c0_i32_0 : i32, i32
  }
  func.func @transform_2(%arg0: i32) -> (i32, i32) {
    %c0_i32 = arith.constant 0 : i32
    %c0_i32_0 = arith.constant 0 : i32
    %c0_i32_1 = arith.constant 0 : i32
    return %c0_i32, %c0_i32_0 : i32, i32
  }
  func.func @transform_3(%arg0: i32) -> (i32, i32) {
    %c0_i32 = arith.constant 0 : i32
    %c0_i32_0 = arith.constant 0 : i32
    %c0_i32_1 = arith.constant 0 : i32
    return %c0_i32, %c0_i32_0 : i32, i32
  }
  func.func @transform_4(%arg0: i32) -> (i32, i32) {
    %c0_i32 = arith.constant 0 : i32
    %c0_i32_0 = arith.constant 0 : i32
    %c0_i32_1 = arith.constant 0 : i32
    return %c0_i32, %c0_i32_0 : i32, i32
  }
  func.func @transform_5(%arg0: i32) -> (i32, i32) {
    %c0_i32 = arith.constant 0 : i32
    %c0_i32_0 = arith.constant 0 : i32
    return %arg0, %c0_i32 : i32, i32
  }
}

</mosaic_0001>

<bundles_post_ra>
// kernel: tpu_custom_call.1
= control target key start
LH: loop header
LB: loop body
LE: loop exit
PB: predicated region body
PF: predicated region fallthrough
CT: control target
= control target key end

     0   :  { %10 = vsyncpa [#allocation3], 0  ;;  %s701_s0 = inlined_call_operand.hbm [shape: f32[16,32], index: 0, kind: input, shape index: {}]   ;;  %s702_s1 = inlined_call_operand.hbm [shape: f32[16,16], index: 1, kind: input, shape index: {}]   ;;  %s703_s2 = inlined_call_operand.hbm [shape: f32[32,32], index: 2, kind: input, shape index: {}]   ;;  %s704_s3 = inlined_call_operand.hbm [shape: f32[32,32], index: 3, kind: input, shape index: {}]   ;;  %s705_s4 = inlined_call_operand.vmem [shape: f32[1,32], index: 4, kind: input, shape index: {}]   ;;  %s706_s5 = inlined_call_operand.hbm [shape: f32[16,32], index: 5, kind: output, shape index: {}]  }
   0x1   :  { %11 = vsyncpa [#allocation6], 0 }
   0x2   :  { %12 = vsyncpa [#allocation9], 0 }
   0x3   :  { %13 = vsyncpa [#allocation4], 0  ;;  %s564_s18 = smov [#allocation5]   ;;  %s565_s20 = smov [#allocation2]  }
   0x4   :  { %s31_s19 = sshll.u32 %s564_s18, 4  ;;  %s19_s21 = sshll.u32 %s565_s20, 4  ;;  %s32_s19 = int_to_ptr.vmem [resolvable:$true] %s31_s19  ;;  %s601_s21 = int_to_ptr.vmem [resolvable:$true] %s19_s21 }
   0x5   :  { %s446_s24 = scalar_lea.hbm %s702_s1, 256 }
   0x6   :  { %p447_p0 = scmp.ne.s32.totalorder %s702_s1, %s446_s24  ;;  %p450_p1 = scmp.lt.u32.totalorder %s446_s24, %s702_s1 }
   0x8   :  { %p452_p2 = pnand %p450_p1, %p447_p0 }
   0xa   :  { %455 = shalt.err (!%p452_p2)
}
   0xb   :  { %s456_s29 = scalar_lea.vmem %s32_s19, 256  ;;  %p461_p4 = scmp.lt.s32.totalorder %s32_s19, %s32_s19 }
   0xc   :  { %p457_p3 = scmp.ne.s32.totalorder %s32_s19, %s456_s29  ;;  %p462_p5 = scmp.lt.s32.totalorder %s456_s29, %s456_s29 }
   0xe   :  { %p463_p6 = por %p462_p5, %p461_p4 }
  0x10   :  { %p464_p7 = pnand %p463_p6, %p457_p3 }
  0x12   :  { %467 = shalt.err (!%p464_p7)
}
  0x13   :  { %s566_s30 = smov 128   ;;  %s567_s6 = smov 8  }
  0x14   :  { %37 = dma.hbm_to_vmem [thread:$0]  %s702_s1, 256, %s32_s19, [#allocation6], %s566_s30, %s566_s30, %s567_s6  }
  0x15   :  { %s468_s11 = scalar_lea.hbm %s701_s0, 256 }
  0x16   :  { %p469_p8 = scmp.ne.s32.totalorder %s701_s0, %s468_s11  ;;  %p472_p9 = scmp.lt.u32.totalorder %s468_s11, %s701_s0 }
  0x18   :  { %p474_p10 = pnand %p472_p9, %p469_p8 }
  0x1a   :  { %477 = shalt.err (!%p474_p10)
}
  0x1b   :  { %s478_s16 = scalar_lea.vmem %s601_s21, 256  ;;  %p483_p12 = scmp.lt.s32.totalorder %s601_s21, %s601_s21 }
  0x1c   :  { %p479_p11 = scmp.ne.s32.totalorder %s601_s21, %s478_s16  ;;  %p484_p13 = scmp.lt.s32.totalorder %s478_s16, %s478_s16 }
  0x1e   :  { %p485_p0 = por %p484_p13, %p483_p12 }
  0x20   :  { %p486_p1 = pnand %p485_p0, %p479_p11 }
  0x22   :  { %489 = shalt.err (!%p486_p1)
}
  0x23   :  { %25 = dma.hbm_to_vmem [thread:$0]  %s701_s0, 256, %s601_s21, [#allocation3], %s566_s30, %s566_s30, %s567_s6  }
  0x24   :  { %s568_s18 = smov [#allocation7]   ;;  %s569_s20 = smov [#allocation8]  }
  0x25   :  { %s43_s19 = sshll.u32 %s568_s18, 4  ;;  %s55_s22 = sshll.u32 %s569_s20, 4  ;;  %s44_s19 = int_to_ptr.vmem [resolvable:$true] %s43_s19  ;;  %s638_s22 = int_to_ptr.vmem [resolvable:$true] %s55_s22 }
  0x26   :  { %s490_s25 = scalar_lea.hbm %s703_s2, 512 }
  0x27   :  { %p491_p2 = scmp.ne.s32.totalorder %s703_s2, %s490_s25  ;;  %p494_p3 = scmp.lt.u32.totalorder %s490_s25, %s703_s2 }
  0x29   :  { %p496_p4 = pnand %p494_p3, %p491_p2 }
  0x2b   :  { %499 = shalt.err (!%p496_p4)
}
  0x2c   :  { %s500_s0 = scalar_lea.vmem %s44_s19, 512  ;;  %p505_p6 = scmp.lt.s32.totalorder %s44_s19, %s44_s19 }
  0x2d   :  { %p501_p5 = scmp.ne.s32.totalorder %s44_s19, %s500_s0  ;;  %p506_p7 = scmp.lt.s32.totalorder %s500_s0, %s500_s0 }
  0x2f   :  { %p507_p8 = por %p506_p7, %p505_p6 }
  0x31   :  { %p508_p9 = pnand %p507_p8, %p501_p5 }
  0x33   :  { %511 = shalt.err (!%p508_p9)
}
  0x34   :  { %49 = dma.hbm_to_vmem [thread:$0]  %s703_s2, 512, %s44_s19, [#allocation6], %s566_s30, %s566_s30, %s567_s6  }
  0x35   :  { %s512_s10 = scalar_lea.hbm %s704_s3, 512 }
  0x36   :  { %p513_p10 = scmp.ne.s32.totalorder %s704_s3, %s512_s10  ;;  %p516_p11 = scmp.lt.u32.totalorder %s512_s10, %s704_s3 }
  0x38   :  { %p518_p12 = pnand %p516_p11, %p513_p10 }
  0x3a   :  { %521 = shalt.err (!%p518_p12)
}
  0x3b   :  { %s522_s15 = scalar_lea.vmem %s638_s22, 512  ;;  %p527_p0 = scmp.lt.s32.totalorder %s638_s22, %s638_s22 }
  0x3c   :  { %p523_p13 = scmp.ne.s32.totalorder %s638_s22, %s522_s15  ;;  %p528_p1 = scmp.lt.s32.totalorder %s522_s15, %s522_s15 }
  0x3e   :  { %p529_p2 = por %p528_p1, %p527_p0 }
  0x40   :  { %p530_p3 = pnand %p529_p2, %p523_p13 }
  0x42   :  { %533 = shalt.err (!%p530_p3)
}
  0x43   :  { %61 = dma.hbm_to_vmem [thread:$0]  %s704_s3, 512, %s638_s22, [#allocation9], %s566_s30, %s566_s30, %s567_s6  }
  0x44   :  { %556 = dma.done.wait [#allocation3], 256  }
  0x45   :  { %557 = vsyncadd [#allocation3], 4294967040 }
  0x46   :  { %558 = dma.done.wait [#allocation6], 768  }
  0x47   :  { %559 = vsyncadd [#allocation6], 4294966528 }
  0x48   :  { %560 = dma.done.wait [#allocation9], 512  }
  0x49   :  { %561 = vsyncadd [#allocation9], 4294966784  ;;  %vm80_vm0 = vcmask 130048   ;;  %v76_v0 = vld [vmem:[#allocation2] sm:$0xff]  ;;  %v77_v1 = vld [vmem:[#allocation2 + $0x8] sm:$0xff]  ;;  %vm170_vm1 = vcmask 261120  }
  0x4a   :  { %v78_v2 = vld [vmem:[#allocation5] sm:$0xff]  ;;  %v417_v3 = vpack.c.bf16 %v77_v1, %v76_v0  ;;  %v162_v4 = vld [vmem:[#allocation7] sm:$0xff]  ;;  %v163_v5 = vld [vmem:[#allocation7 + $0x8] sm:$0xff]  ;;  %414 = vmatprep.mubr.msk.f32.mxu1 %vm170_vm1, %v76_v0  ;;  %s570_s17 = smov [#allocation10]  }
  0x4b   :  { %392 = vmatprep.mubr.msk.f32.mxu0 %vm80_vm0, %v78_v2  ;;  %v429_v6 = vpack.c.bf16 %v163_v5, %v162_v4  ;;  %v166_v7 = vld [vmem:[#allocation8] sm:$0xff]  ;;  %v167_v8 = vld [vmem:[#allocation8 + $0x8] sm:$0xff]  ;;  %v164_v9 = vld [vmem:[#allocation7 + $0x10] sm:$0xff]  ;;  %s351_s18 = sshll.u32 %s570_s17, 4  ;;  %s352_s18 = int_to_ptr.vmem [resolvable:$true] %s351_s18 }
  0x4c   :  { %418 = vmatprep.subr.bf16.mxu0 %v417_v3  ;;  %v421_v10 = vpack.c.bf16 %v167_v8, %v166_v7  ;;  %v165_v11 = vld [vmem:[#allocation7 + $0x18] sm:$0xff]  ;;  %v168_v12 = vld [vmem:[#allocation8 + $0x10] sm:$0xff]  ;;  %v371_v22 = vld [vmem:[%s705_s4] ss:$0 sm:$0xff]  ;;  %s534_s19 = scalar_lea.vmem %s352_s18, 256  ;;  %p539_p5 = scmp.lt.s32.totalorder %s352_s18, %s352_s18 }
  0x4d   :  { %v169_v13 = vld [vmem:[#allocation8 + $0x18] sm:$0xff]  ;;  %420 = vmatpush3.bf16.msra.mxu0 %v417_v3  ;;  %430 = vmatprep.subr.bf16.mxu1 %v429_v6  ;;  %v433_v15 = vpack.c.bf16 %v165_v11, %v164_v9  ;;  %p535_p4 = scmp.ne.s32.totalorder %s352_s18, %s534_s19  ;;  %p540_p6 = scmp.lt.s32.totalorder %s534_s19, %s534_s19 }
  0x4e   :  { %v79_v14 = vld [vmem:[#allocation5 + $0x8] sm:$0xff]  ;;  %422 = vmatprep.subr.bf16.mxu0 %v421_v10  ;;  %432 = vmatpush3.bf16.msra.mxu1 %v429_v6  ;;  %v425_v16 = vpack.c.bf16 %v169_v13, %v168_v12 }
  0x4f   :  { %434 = vmatprep.subr.bf16.mxu1 %v433_v15  ;;  %p541_p7 = por %p540_p6, %p539_p5 }
  0x50   :  { %393 = vmatmul.mubr.msk.f32.vlgmr.msra.gmra.mrb[0].mxu0 %vm80_vm0, %v79_v14 }
  0x51   :  { %424 = vmatpush3.bf16.msra.mxu0 %v421_v10  ;;  %p542_p8 = pnand %p541_p7, %p535_p4 }
  0x52   :  { %426 = vmatprep.subr.bf16.mxu0 %v425_v16  ;;  %436 = vmatpush3.bf16.msra.mxu1 %v433_v15 }
  0x55   :  { %428 = vmatpush3.bf16.msra.mxu0 %v425_v16  ;;  %415 = vmatmul.mubr.msk.f32.vlgmr.msra.gmra.mrb[0].mxu1 %vm170_vm1, %v77_v1 }
 0x123   :  { %v394_v17 = vpop.f32.mrb[0].mxu0 }
 0x124   :  { %v153_v18 = vpop.f32.mrb[1].mxu0 }
 0x125   :  { %403 = vmatprep.mubr.msk.f32.mxu0 %vm170_vm1, %v153_v18 }
 0x126   :  { %404 = vmatmul.mubr.msk.f32.vlgmr.msra.gmra.mrb[2].mxu0 %vm170_vm1, %v394_v17 }
 0x128   :  { %v416_v19 = vpop.f32.mrb[0].mxu1 }
 0x129   :  { %v324_v20 = vpop.f32.mrb[1].mxu1 }
 0x1f9   :  { %v405_v21 = vpop.f32.mrb[2].mxu0 }
 0x1fa   :  { %v330_v23 = vadd.f32 %v416_v19, %v405_v21  ;;  %v243_v24 = vpop.f32.mrb[3].mxu0 }
 0x1fb   :  { %v325_v25 = vadd.f32 %v324_v20, %v243_v24 }
 0x1fc   :  { %v341_v26 = vadd.f32 %v371_v22, %v330_v23 }
 0x1fd   :  { %v340_v27 = vadd.f32 %v371_v22, %v325_v25 }
 0x1fe   :  { %v343_v28 = vmax.f32 %v341_v26, 0.0 }
 0x1ff   :  { %v342_v29 = vmax.f32 %v340_v27, 0.0 }
 0x200   :  { %345 = vst.msk [vmem:[#allocation10 + $0x8] sm:$0xff] %vm170_vm1, %v343_v28 }
 0x201   :  { %344 = vst.msk [vmem:[#allocation10] sm:$0xff] %vm170_vm1, %v342_v29 }
 0x202   :  { %545 = shalt.err (!%p542_p8)
}
 0x203   :  { %s546_s22 = scalar_lea.hbm %s706_s5, 256 }
 0x204   :  { %p547_p9 = scmp.ne.s32.totalorder %s706_s5, %s546_s22  ;;  %p550_p10 = scmp.lt.u32.totalorder %s546_s22, %s706_s5 }
 0x206   :  { %p552_p11 = pnand %p550_p10, %p547_p9 }
 0x208   :  { %555 = shalt.err (!%p552_p11)
}
 0x209   :  { %357 = dma.vmem_to_hbm [thread:$0]  %s352_s18, 256, %s706_s5, [#allocation4], %s566_s30, %s566_s30, %s567_s6  }
 0x20a   :  { %562 = dma.done.wait [#allocation4], 256  }
 0x20b   :  { %563 = vsyncadd [#allocation4], 4294967040 }
 0x20c   :  { %361 = vsyncpa [#allocation3], 1 }
 0x20d   :  { %362 = vsyncpa [#allocation6], 1 }
 0x20e   :  { %363 = vsyncpa [#allocation9], 1 }
 0x20f   :  { %364 = vsyncpa [#allocation4], 1 }

</bundles_post_ra>
